<compile_context>
chip_gen: v7x
topology: tpu7x:2x2x1
jax: 0.10.0
libtpu: 0.0.40
codegen_flags: <defaults>
</compile_context>

<pallas_src>
import jax
import jax.numpy as jnp
from jax.experimental import pallas as pl
from jax.experimental.pallas import tpu as pltpu

THRESH = 0.5
DECAY = 0.25
TIME_WINDOW = 4
LANES = 128

# Below this many elements per timestep, XLA's fused elementwise chain beats
# the pallas_call launch + pipeline-setup overhead.
_SMALL_INPUT_ELEMS = 8192


def _round_up(v, m):
    return ((v + m - 1) // m) * m


def _sublane_multiple(dtype):
    # f32: 8 sublanes, bf16/f16: 16, 8-bit: 32.
    return {4: 8, 2: 16, 1: 32}.get(jnp.dtype(dtype).itemsize, 8)


def _tpu_generation():
    """Best-effort generation sniff -> (num_tensorcores, max_tile_rows, vmem_limit_bytes)."""
    kind = ""
    try:
        dev = jax.devices()[0]
        if dev.platform == "tpu":
            kind = str(getattr(dev, "device_kind", "")).lower()
    except Exception:
        pass
    if "v7" in kind or "7x" in kind:
        # 2 TCs/chip, 64 MiB VMEM per TC (32 MiB scoped default): 2048-row tiles
        # (4 MiB block, ~16 MiB double-buffered in+out) are safe; don't go bigger.
        return 2, 2048, 32 << 20
    if "v6" in kind:
        # 1 TC, 128 MiB VMEM (32 MiB scoped default).
        return 1, 2048, 32 << 20
    # v5e / unknown: 1 TC, 16 MiB scoped-VMEM default -> keep ~8 MiB footprint.
    return 1, 1024, None


def _mem_update_kernel(x_ref, out_ref):
    # x_ref / out_ref: (T, tile_r, 128) or (T, tile_cols) VMEM tiles.
    T = x_ref.shape[0]
    out_dt = out_ref.dtype
    mem = x_ref[0]
    spiked = mem > THRESH
    out_ref[0] = spiked.astype(out_dt)
    for i in range(1, T):  # T == 4: unrolled at trace time
        xi = x_ref[i]
        # mem*decay*(1-spike) + x[i]  ==  where(spike, x[i], mem*decay + x[i])
        # (bit-identical for finite mem; differs only when mem*decay is Inf/NaN)
        mem = jnp.where(spiked, xi, mem * DECAY + xi)
        spiked = mem > THRESH
        out_ref[i] = spiked.astype(out_dt)


def _mem_update_jnp(x, out_dtype):
    """Small-input fallback: plain fused elementwise recurrence."""
    T = x.shape[0]
    mem = x[0]
    spike = mem > THRESH
    outs = [spike.astype(out_dtype)]
    for i in range(1, T):
        mem = jnp.where(spike, x[i], mem * DECAY + x[i])
        spike = mem > THRESH
        outs.append(spike.astype(out_dtype))
    return jnp.stack(outs, axis=0)


def mem_update(x, out_dtype=None, use_pallas=None):
    """x: (T, ...) float array. Returns 0/1 spikes with the same shape.

    out_dtype: spike dtype (defaults to x.dtype; pass bf16/int8 to shrink the
               HBM write stream of this bandwidth-bound kernel).
    use_pallas: force/skip the Pallas path (default: auto by size).
    """
    T = x.shape[0]
    orig_shape = x.shape
    in_dtype = x.dtype
    out_dtype = in_dtype if out_dtype is None else jnp.dtype(out_dtype)

    total = 1
    for d in x.shape[1:]:
        total *= d

    if use_pallas is None:
        use_pallas = total >= _SMALL_INPUT_ELEMS
    if (not use_pallas) or total == 0:
        return _mem_update_jnp(x, out_dtype)

    num_tc, max_tile_rows, vmem_limit = _tpu_generation()
    min_grid_steps = 2 if num_tc > 1 else 1
    # Output dtype may be narrower than input: honor the stricter sublane rule.
    sub_mult = max(_sublane_multiple(in_dtype), _sublane_multiple(out_dtype))

    compiler_params = pltpu.CompilerParams(
        dimension_semantics=("parallel",),
        vmem_limit_bytes=vmem_limit,
    )

    if total % LANES == 0:
        # Lane-aligned fast path: (T, R, 128) blocks, full sublane utilization.
        R = total // LANES
        x3 = x.reshape(T, R, LANES)
        rows_for_steps = _round_up(pl.cdiv(R, min_grid_steps), sub_mult)
        tile_r = max(sub_mult, min(max_tile_rows, rows_for_steps))
        grid = (pl.cdiv(R, tile_r),)  # partial edge block handled by masking
        out = pl.pallas_call(
            _mem_update_kernel,
            out_shape=jax.ShapeDtypeStruct((T, R, LANES), out_dtype),
            grid_spec=pltpu.PrefetchScalarGridSpec(
                num_scalar_prefetch=0,
                grid=grid,
                in_specs=[pl.BlockSpec((T, tile_r, LANES), lambda i: (0, i, 0))],
                out_specs=pl.BlockSpec((T, tile_r, LANES), lambda i: (0, i, 0)),
            ),
            compiler_params=compiler_params,
        )(x3)
        return out.reshape(orig_shape)

    # Non-lane-aligned totals: run directly on the 2-D (T, total) view with a
    # masked partial edge block -- no jnp.pad / tail-slice extra HBM passes.
    # (Block second-to-last dim T equals the full dim; last dim is a multiple
    # of 128, so the (8,128) constraint is satisfied.)
    x2 = x.reshape(T, total)
    max_tile_cols = max_tile_rows * LANES
    cols_for_steps = _round_up(pl.cdiv(total, min_grid_steps), LANES)
    tile_c = max(LANES, min(max_tile_cols, cols_for_steps))
    grid = (pl.cdiv(total, tile_c),)
    out = pl.pallas_call(
        _mem_update_kernel,
        out_shape=jax.ShapeDtypeStruct((T, total), out_dtype),
        grid_spec=pltpu.PrefetchScalarGridSpec(
            num_scalar_prefetch=0,
            grid=grid,
            in_specs=[pl.BlockSpec((T, tile_c), lambda i: (0, i))],
            out_specs=pl.BlockSpec((T, tile_c), lambda i: (0, i)),
        ),
        compiler_params=compiler_params,
    )(x2)
    return out.reshape(orig_shape)


def mem_update_ref(x):
    """Pure-JAX reference mirroring the PyTorch forward (literal formula)."""
    T = x.shape[0]
    outs = []
    mem = x[0]
    spike = (mem > THRESH).astype(x.dtype)
    outs.append(spike)
    for i in range(1, T):
        mem = mem * DECAY * (1.0 - spike) + x[i]
        spike = (mem > THRESH).astype(x.dtype)
        outs.append(spike)
    return jnp.stack(outs, axis=0)


# TODO(synk): ActFun.backward (surrogate gradient) is training-only and not part
# of this forward-pass kernel.

if __name__ == "__main__":
    # Main case: conv-style feature maps, lane-aligned (3-D fast path, Pallas).
    T, N, C, H, W = TIME_WINDOW, 2, 8, 32, 32
    x = jax.random.normal(jax.random.PRNGKey(0), (T, N, C, H, W), dtype=jnp.float32)
    out = jax.block_until_ready(mem_update(x))
    ref = mem_update_ref(x)
    assert out.shape == x.shape and out.dtype == x.dtype
    assert jnp.array_equal(out, ref), "Pallas output mismatch vs reference"

    # Non-lane-aligned shape -> 2-D masked-edge-block path (force Pallas).
    x_odd = jax.random.normal(jax.random.PRNGKey(1), (TIME_WINDOW, 3, 5, 7, 11),
                              dtype=jnp.float32)
    out_odd = jax.block_until_ready(mem_update(x_odd, use_pallas=True))
    assert jnp.array_equal(out_odd, mem_update_ref(x_odd)), "odd-shape mismatch"

    # Narrow-output (bf16) write-stream variant.
    out_bf16 = jax.block_until_ready(mem_update(x, out_dtype=jnp.bfloat16))
    assert out_bf16.dtype == jnp.bfloat16
    assert jnp.array_equal(out_bf16.astype(jnp.float32), ref), "bf16-out mismatch"

    # Small-input fallback path (plain fused jnp).
    x_small = jax.random.normal(jax.random.PRNGKey(2), (TIME_WINDOW, 2, 4, 16, 16),
                                dtype=jnp.float32)
    out_small = jax.block_until_ready(mem_update(x_small))
    assert jnp.array_equal(out_small, mem_update_ref(x_small)), "small-input mismatch"

    # module bookkeeping (total_spikes / total_neurons of the last step)
    total_spikes = float(out[-1].sum())
    total_neurons = out[-1].size
    _ = (total_spikes, total_neurons)

    print("KERNEL_OK")
</pallas_src>

<mosaic_0001>
module attributes {stable_mosaic.version = 11 : i64} {
  func.func @_mem_update_kernel(%arg0: i32, %arg1: memref<4x128x128xf32, #tpu.memory_space<vmem>>, %arg2: memref<4x128x128xf32, #tpu.memory_space<vmem>>) attributes {dimension_semantics = [#tpu.dimension_semantics<parallel>], iteration_bounds = array<i64: 1>, scalar_prefetch = 0 : i64, scratch_operands = 0 : i64, tpu.core_type = #tpu.core_type<tc>, window_params = [{transform_indices = @transform_0, window_bounds = array<i64: 4, 128, 128>}, {transform_indices = @transform_1, window_bounds = array<i64: 4, 128, 128>}]} {
    %c0 = arith.constant 0 : index
    %c0_0 = arith.constant 0 : index
    %c0_1 = arith.constant 0 : index
    %0 = vector.load %arg1[%c0, %c0_0, %c0_1] : memref<4x128x128xf32, #tpu.memory_space<vmem>>, vector<1x128x128xf32>
    %1 = vector.shape_cast %0 : vector<1x128x128xf32> to vector<128x128xf32>
    %cst = arith.constant 5.000000e-01 : f32
    %2 = vector.broadcast %cst : f32 to vector<128x128xf32>
    %3 = arith.cmpf ogt, %1, %2 : vector<128x128xf32>
    %4 = arith.extui %3 : vector<128x128xi1> to vector<128x128xi32>
    %5 = arith.sitofp %4 : vector<128x128xi32> to vector<128x128xf32>
    %c0_2 = arith.constant 0 : index
    %c0_3 = arith.constant 0 : index
    %c0_4 = arith.constant 0 : index
    %6 = vector.load %arg2[%c0_2, %c0_3, %c0_4] : memref<4x128x128xf32, #tpu.memory_space<vmem>>, vector<1x128x128xf32>
    %7 = vector.shape_cast %6 : vector<1x128x128xf32> to vector<128x128xf32>
    %8 = vector.shape_cast %5 : vector<128x128xf32> to vector<1x128x128xf32>
    tpu.vector_store %arg2[%c0_2, %c0_3, %c0_4], %8 {strides = array<i32>} : memref<4x128x128xf32, #tpu.memory_space<vmem>>, vector<1x128x128xf32>,
    %c1 = arith.constant 1 : index
    %c0_5 = arith.constant 0 : index
    %c0_6 = arith.constant 0 : index
    %9 = vector.load %arg1[%c1, %c0_5, %c0_6] : memref<4x128x128xf32, #tpu.memory_space<vmem>>, vector<1x128x128xf32>
    %10 = vector.shape_cast %9 : vector<1x128x128xf32> to vector<128x128xf32>
    %cst_7 = arith.constant 2.500000e-01 : f32
    %11 = vector.broadcast %cst_7 : f32 to vector<128x128xf32>
    %12 = arith.mulf %1, %11 : vector<128x128xf32>
    %13 = arith.addf %12, %10 : vector<128x128xf32>
    %14 = arith.select %3, %10, %13 : vector<128x128xi1>, vector<128x128xf32>
    %cst_8 = arith.constant 5.000000e-01 : f32
    %15 = vector.broadcast %cst_8 : f32 to vector<128x128xf32>
    %16 = arith.cmpf ogt, %14, %15 : vector<128x128xf32>
    %17 = arith.extui %16 : vector<128x128xi1> to vector<128x128xi32>
    %18 = arith.sitofp %17 : vector<128x128xi32> to vector<128x128xf32>
    %c1_9 = arith.constant 1 : index
    %c0_10 = arith.constant 0 : index
    %c0_11 = arith.constant 0 : index
    %19 = vector.load %arg2[%c1_9, %c0_10, %c0_11] : memref<4x128x128xf32, #tpu.memory_space<vmem>>, vector<1x128x128xf32>
    %20 = vector.shape_cast %19 : vector<1x128x128xf32> to vector<128x128xf32>
    %21 = vector.shape_cast %18 : vector<128x128xf32> to vector<1x128x128xf32>
    tpu.vector_store %arg2[%c1_9, %c0_10, %c0_11], %21 {strides = array<i32>} : memref<4x128x128xf32, #tpu.memory_space<vmem>>, vector<1x128x128xf32>,
    %c2 = arith.constant 2 : index
    %c0_12 = arith.constant 0 : index
    %c0_13 = arith.constant 0 : index
    %22 = vector.load %arg1[%c2, %c0_12, %c0_13] : memref<4x128x128xf32, #tpu.memory_space<vmem>>, vector<1x128x128xf32>
    %23 = vector.shape_cast %22 : vector<1x128x128xf32> to vector<128x128xf32>
    %cst_14 = arith.constant 2.500000e-01 : f32
    %24 = vector.broadcast %cst_14 : f32 to vector<128x128xf32>
    %25 = arith.mulf %14, %24 : vector<128x128xf32>
    %26 = arith.addf %25, %23 : vector<128x128xf32>
    %27 = arith.select %16, %23, %26 : vector<128x128xi1>, vector<128x128xf32>
    %cst_15 = arith.constant 5.000000e-01 : f32
    %28 = vector.broadcast %cst_15 : f32 to vector<128x128xf32>
    %29 = arith.cmpf ogt, %27, %28 : vector<128x128xf32>
    %30 = arith.extui %29 : vector<128x128xi1> to vector<128x128xi32>
    %31 = arith.sitofp %30 : vector<128x128xi32> to vector<128x128xf32>
    %c2_16 = arith.constant 2 : index
    %c0_17 = arith.constant 0 : index
    %c0_18 = arith.constant 0 : index
    %32 = vector.load %arg2[%c2_16, %c0_17, %c0_18] : memref<4x128x128xf32, #tpu.memory_space<vmem>>, vector<1x128x128xf32>
    %33 = vector.shape_cast %32 : vector<1x128x128xf32> to vector<128x128xf32>
    %34 = vector.shape_cast %31 : vector<128x128xf32> to vector<1x128x128xf32>
    tpu.vector_store %arg2[%c2_16, %c0_17, %c0_18], %34 {strides = array<i32>} : memref<4x128x128xf32, #tpu.memory_space<vmem>>, vector<1x128x128xf32>,
    %c3 = arith.constant 3 : index
    %c0_19 = arith.constant 0 : index
    %c0_20 = arith.constant 0 : index
    %35 = vector.load %arg1[%c3, %c0_19, %c0_20] : memref<4x128x128xf32, #tpu.memory_space<vmem>>, vector<1x128x128xf32>
    %36 = vector.shape_cast %35 : vector<1x128x128xf32> to vector<128x128xf32>
    %cst_21 = arith.constant 2.500000e-01 : f32
    %37 = vector.broadcast %cst_21 : f32 to vector<128x128xf32>
    %38 = arith.mulf %27, %37 : vector<128x128xf32>
    %39 = arith.addf %38, %36 : vector<128x128xf32>
    %40 = arith.select %29, %36, %39 : vector<128x128xi1>, vector<128x128xf32>
    %cst_22 = arith.constant 5.000000e-01 : f32
    %41 = vector.broadcast %cst_22 : f32 to vector<128x128xf32>
    %42 = arith.cmpf ogt, %40, %41 : vector<128x128xf32>
    %43 = arith.extui %42 : vector<128x128xi1> to vector<128x128xi32>
    %44 = arith.sitofp %43 : vector<128x128xi32> to vector<128x128xf32>
    %c3_23 = arith.constant 3 : index
    %c0_24 = arith.constant 0 : index
    %c0_25 = arith.constant 0 : index
    %45 = vector.load %arg2[%c3_23, %c0_24, %c0_25] : memref<4x128x128xf32, #tpu.memory_space<vmem>>, vector<1x128x128xf32>
    %46 = vector.shape_cast %45 : vector<1x128x128xf32> to vector<128x128xf32>
    %47 = vector.shape_cast %44 : vector<128x128xf32> to vector<1x128x128xf32>
    tpu.vector_store %arg2[%c3_23, %c0_24, %c0_25], %47 {strides = array<i32>} : memref<4x128x128xf32, #tpu.memory_space<vmem>>, vector<1x128x128xf32>,
    return
  }
  func.func @transform_0(%arg0: i32) -> (i32, i32, i32) {
    %c0_i32 = arith.constant 0 : i32
    %c0_i32_0 = arith.constant 0 : i32
    %c0_i32_1 = arith.constant 0 : i32
    return %c0_i32, %arg0, %c0_i32_0 : i32, i32, i32
  }
  func.func @transform_1(%arg0: i32) -> (i32, i32, i32) {
    %c0_i32 = arith.constant 0 : i32
    %c0_i32_0 = arith.constant 0 : i32
    %c0_i32_1 = arith.constant 0 : i32
    return %c0_i32, %arg0, %c0_i32_0 : i32, i32, i32
  }
}

</mosaic_0001>

<bundles_post_ra>
// kernel: tpu_custom_call.1
= control target key start
LH: loop header
LB: loop body
LE: loop exit
PB: predicated region body
PF: predicated region fallthrough
CT: control target
= control target key end

     0   :  { %6 = vsyncpa [#allocation3], 0  ;;  %s1258_s0 = inlined_call_operand.hbm [shape: f32[4,128,128], index: 0, kind: input, shape index: {}]   ;;  %s1259_s1 = inlined_call_operand.hbm [shape: f32[4,128,128], index: 1, kind: output, shape index: {}]  }
   0x1   :  { %7 = vsyncpa [#allocation4], 0  ;;  %s627_s6 = smov [#allocation2]   ;;  %s579_s10 = scalar_lea.hbm %s1258_s0, 8192 }
   0x2   :  { %s13_s7 = sshll.u32 %s627_s6, 4  ;;  %p580_p0 = scmp.ne.s32.totalorder %s1258_s0, %s579_s10  ;;  %s14_s7 = int_to_ptr.vmem [resolvable:$true] %s13_s7 }
   0x3   :  { %p583_p1 = scmp.lt.u32.totalorder %s579_s10, %s1258_s0 }
   0x5   :  { %p585_p2 = pnand %p583_p1, %p580_p0 }
   0x7   :  { %588 = shalt.err (!%p585_p2)
}
   0x8   :  { %s589_s15 = scalar_lea.vmem %s14_s7, 8192  ;;  %p594_p4 = scmp.lt.s32.totalorder %s14_s7, %s14_s7 }
   0x9   :  { %p590_p3 = scmp.ne.s32.totalorder %s14_s7, %s589_s15  ;;  %p595_p5 = scmp.lt.s32.totalorder %s589_s15, %s589_s15 }
   0xb   :  { %p596_p6 = por %p595_p5, %p594_p4 }
   0xd   :  { %p597_p7 = pnand %p596_p6, %p590_p3 }
   0xf   :  { %600 = shalt.err (!%p597_p7)
}
  0x10   :  { %s628_s16 = smov 128   ;;  %s629_s17 = smov 8  }
  0x11   :  { %19 = dma.hbm_to_vmem [thread:$0]  %s1258_s0, 8192, %s14_s7, [#allocation3], %s628_s16, %s628_s16, %s629_s17  }
  0x12   :  { %623 = dma.done.wait [#allocation3], 8192  }
  0x13   :  { %624 = vsyncadd [#allocation3], 4294959104  ;;  %v657_v0 = vld [vmem:[#allocation2] sm:$0xff]  ;;  %v659_v1 = vld [vmem:[#allocation2 + $0x8] sm:$0xff]  ;;  %v630_v7 = vmov 0.0   ;;  %s631_s0 = smov [#allocation5]  }
  0x14   :  { %v661_v2 = vld [vmem:[#allocation2 + $0x10] sm:$0xff]  ;;  %vm39_vm0 = vcmp.gt.f32.partialorder %v657_v0, 0.5  ;;  %v665_v3 = vmul.f32 0.25, %v657_v0  ;;  %vm40_vm1 = vcmp.gt.f32.partialorder %v659_v1, 0.5  ;;  %v669_v4 = vmul.f32 0.25, %v659_v1  ;;  %v671_v5 = vld [vmem:[#allocation2 + $0x18] sm:$0xff] }
  0x15   :  { %v673_v6 = vld [vmem:[#allocation2 + $0x20] sm:$0xff]  ;;  %v510_v8 = vsel %vm39_vm0, 1.0, %v630_v7  ;;  %v511_v9 = vsel %vm40_vm1, 1.0, %v630_v7  ;;  %vm41_vm2 = vcmp.gt.f32.partialorder %v661_v2, 0.5  ;;  %v683_v10 = vmul.f32 0.25, %v661_v2  ;;  %v685_v11 = vld [vmem:[#allocation2 + $0x28] sm:$0xff] }
  0x16   :  { %v687_v12 = vld [vmem:[#allocation2 + $0x30] sm:$0xff]  ;;  %87 = vst [vmem:[#allocation5] sm:$0xff] %v510_v8  ;;  %88 = vst [vmem:[#allocation5 + $0x8] sm:$0xff] %v511_v9  ;;  %v512_v13 = vsel %vm41_vm2, 1.0, %v630_v7  ;;  %vm42_vm3 = vcmp.gt.f32.partialorder %v671_v5, 0.5  ;;  %v694_v14 = vmul.f32 0.25, %v671_v5 }
  0x17   :  { %vm43_vm4 = vcmp.gt.f32.partialorder %v673_v6, 0.5  ;;  %v697_v15 = vld [vmem:[#allocation2 + $0x38] sm:$0xff]  ;;  %89 = vst [vmem:[#allocation5 + $0x10] sm:$0xff] %v512_v13  ;;  %v513_v16 = vsel %vm42_vm3, 1.0, %v630_v7  ;;  %v706_v18 = vmul.f32 0.25, %v673_v6  ;;  %vm44_vm5 = vcmp.gt.f32.partialorder %v685_v11, 0.5 }
  0x18   :  { %v514_v17 = vsel %vm43_vm4, 1.0, %v630_v7  ;;  %v709_v19 = vld [vmem:[#allocation2 + $0x40] sm:$0xff]  ;;  %90 = vst [vmem:[#allocation5 + $0x18] sm:$0xff] %v513_v16  ;;  %v515_v20 = vsel %vm44_vm5, 1.0, %v630_v7  ;;  %v125_v21 = vmul.f32 0.25, %v685_v11  ;;  %vm45_vm6 = vcmp.gt.f32.partialorder %v687_v12, 0.5 }
  0x19   :  { %91 = vst [vmem:[#allocation5 + $0x20] sm:$0xff] %v514_v17  ;;  %v126_v22 = vmul.f32 0.25, %v687_v12  ;;  %v717_v23 = vld [vmem:[#allocation2 + $0x48] sm:$0xff]  ;;  %v719_v24 = vld [vmem:[#allocation2 + $0x50] sm:$0xff]  ;;  %92 = vst [vmem:[#allocation5 + $0x28] sm:$0xff] %v515_v20  ;;  %v516_v25 = vsel %vm45_vm6, 1.0, %v630_v7 }
  0x1a   :  { %vm46_vm7 = vcmp.gt.f32.partialorder %v697_v15, 0.5  ;;  %v726_v26 = vmul.f32 0.25, %v697_v15  ;;  %vm47_vm8 = vcmp.gt.f32.partialorder %v709_v19, 0.5  ;;  %v729_v27 = vld [vmem:[#allocation2 + $0x58] sm:$0xff]  ;;  %v731_v28 = vld [vmem:[#allocation2 + $0x60] sm:$0xff]  ;;  %93 = vst [vmem:[#allocation5 + $0x30] sm:$0xff] %v516_v25 }
  0x1b   :  { %v517_v29 = vsel %vm46_vm7, 1.0, %v630_v7  ;;  %v518_v30 = vsel %vm47_vm8, 1.0, %v630_v7  ;;  %v740_v31 = vmul.f32 0.25, %v709_v19  ;;  %vm48_vm9 = vcmp.gt.f32.partialorder %v717_v23, 0.5  ;;  %v743_v32 = vld [vmem:[#allocation2 + $0x68] sm:$0xff]  ;;  %v745_v33 = vld [vmem:[#allocation2 + $0x70] sm:$0xff] }
  0x1c   :  { %94 = vst [vmem:[#allocation5 + $0x38] sm:$0xff] %v517_v29  ;;  %95 = vst [vmem:[#allocation5 + $0x40] sm:$0xff] %v518_v30  ;;  %v519_v34 = vsel %vm48_vm9, 1.0, %v630_v7  ;;  %v751_v35 = vmul.f32 0.25, %v717_v23  ;;  %vm49_vm10 = vcmp.gt.f32.partialorder %v719_v24, 0.5  ;;  %v755_v36 = vmul.f32 0.25, %v719_v24 }
  0x1d   :  { %v757_v37 = vld [vmem:[#allocation2 + $0x78] sm:$0xff]  ;;  %v104_v38 = vld [vmem:[#allocation2 + $0x80] sm:$0xff]  ;;  %96 = vst [vmem:[#allocation5 + $0x48] sm:$0xff] %v519_v34  ;;  %v520_v39 = vsel %vm49_vm10, 1.0, %v630_v7  ;;  %vm50_vm11 = vcmp.gt.f32.partialorder %v729_v27, 0.5  ;;  %v764_v40 = vmul.f32 0.25, %v729_v27 }
  0x1e   :  { %vm51_vm12 = vcmp.gt.f32.partialorder %v731_v28, 0.5  ;;  %v105_v41 = vld [vmem:[#allocation2 + $0x88] sm:$0xff]  ;;  %v106_v42 = vld [vmem:[#allocation2 + $0x90] sm:$0xff]  ;;  %97 = vst [vmem:[#allocation5 + $0x50] sm:$0xff] %v520_v39  ;;  %v521_v43 = vsel %vm50_vm11, 1.0, %v630_v7  ;;  %v774_v45 = vmul.f32 0.25, %v731_v28  ;;  %v136_v55 = vadd.f32 %v665_v3, %v104_v38 }
  0x1f   :  { %v522_v44 = vsel %vm51_vm12, 1.0, %v630_v7  ;;  %vm52_vm13 = vcmp.gt.f32.partialorder %v743_v32, 0.5  ;;  %v107_v46 = vld [vmem:[#allocation2 + $0x98] sm:$0xff]  ;;  %v108_v47 = vld [vmem:[#allocation2 + $0xa0] sm:$0xff]  ;;  %98 = vst [vmem:[#allocation5 + $0x58] sm:$0xff] %v521_v43  ;;  %v781_v49 = vmul.f32 0.25, %v743_v32  ;;  %v137_v57 = vadd.f32 %v669_v4, %v105_v41 }
  0x20   :  { %99 = vst [vmem:[#allocation5 + $0x60] sm:$0xff] %v522_v44  ;;  %v523_v48 = vsel %vm52_vm13, 1.0, %v630_v7  ;;  %vm1260_vm14 = vcmp.gt.f32.partialorder %v745_v33, 0.5  ;;  %v785_v50 = vmul.f32 0.25, %v745_v33  ;;  %v109_v51 = vld [vmem:[#allocation2 + $0xa8] sm:$0xff]  ;;  %v110_v52 = vld [vmem:[#allocation2 + $0xb0] sm:$0xff]  ;;  %v138_v58 = vadd.f32 %v683_v10, %v106_v42 }
  0x21   :  { %100 = vst [vmem:[#allocation5 + $0x68] sm:$0xff] %v523_v48  ;;  %v524_v53 = vsel %vm1260_vm14, 1.0, %v630_v7  ;;  %vm1261_vm15 = vcmp.gt.f32.partialorder %v757_v37, 0.5  ;;  %v792_v54 = vmul.f32 0.25, %v757_v37  ;;  %v139_v59 = vadd.f32 %v694_v14, %v107_v46  ;;  %v112_v20 = vld [vmem:[#allocation2 + $0xc0] sm:$0xff]  ;;  %v113_v5 = vld [vmem:[#allocation2 + $0xc8] sm:$0xff] }
  0x22   :  { %101 = vst [vmem:[#allocation5 + $0x70] sm:$0xff] %v524_v53  ;;  %v525_v56 = vsel %vm1261_vm15, 1.0, %v630_v7  ;;  %v803_v60 = vsel %vm39_vm0, %v104_v38, %v136_v55  ;;  %v140_v61 = vadd.f32 %v706_v18, %v108_v47  ;;  %v141_v62 = vadd.f32 %v125_v21, %v109_v51  ;;  %v111_v18 = vld [vmem:[#allocation2 + $0xb8] sm:$0xff]  ;;  %v114_v6 = vld [vmem:[#allocation2 + $0xd0] sm:$0xff]  ;;  %v116_v38 = vld [vmem:[#allocation2 + $0xe0] sm:$0xff]  ;;  %s498_s20 = sshll.u32 %s631_s0, 4  ;;  %s499_s20 = int_to_ptr.vmem [resolvable:$true] %s498_s20 }
  0x23   :  { %102 = vst [vmem:[#allocation5 + $0x78] sm:$0xff] %v525_v56  ;;  %v142_v63 = vadd.f32 %v126_v22, %v110_v52  ;;  %vm168_vm14 = vcmp.gt.f32.partialorder %v803_v60, 0.5  ;;  %v808_v3 = vmul.f32 0.25, %v803_v60  ;;  %v812_v4 = vsel %vm40_vm1, %v105_v41, %v137_v57  ;;  %v115_v25 = vld [vmem:[#allocation2 + $0xd8] sm:$0xff]  ;;  %v117_v39 = vld [vmem:[#allocation2 + $0xe8] sm:$0xff]  ;;  %v118_v53 = vld [vmem:[#allocation2 + $0xf0] sm:$0xff]  ;;  %p606_p9 = scmp.lt.s32.totalorder %s499_s20, %s499_s20 }
  0x24   :  { %v816_v8 = vsel %vm41_vm2, %v106_v42, %v138_v58  ;;  %v526_v0 = vsel %vm168_vm14, 1.0, %v630_v7  ;;  %vm169_vm0 = vcmp.gt.f32.partialorder %v812_v4, 0.5  ;;  %v823_v9 = vmul.f32 0.25, %v812_v4  ;;  %v119_v57 = vld [vmem:[#allocation2 + $0xf8] sm:$0xff]  ;;  %v234_v58 = vld [vmem:[#allocation2 + $0x100] sm:$0xff]  ;;  %v235_v27 = vld [vmem:[#allocation2 + $0x108] sm:$0xff] }
  0x25   :  { %vm170_vm15 = vcmp.gt.f32.partialorder %v816_v8, 0.5  ;;  %217 = vst [vmem:[#allocation5 + $0x80] sm:$0xff] %v526_v0  ;;  %v527_v1 = vsel %vm169_vm0, 1.0, %v630_v7  ;;  %v833_v10 = vmul.f32 0.25, %v816_v8  ;;  %v837_v13 = vsel %vm42_vm3, %v107_v46, %v139_v59  ;;  %s601_s21 = scalar_lea.vmem %s499_s20, 8192 }
  0x26   :  { %v528_v2 = vsel %vm170_vm15, 1.0, %v630_v7  ;;  %218 = vst [vmem:[#allocation5 + $0x88] sm:$0xff] %v527_v1  ;;  %vm171_vm1 = vcmp.gt.f32.partialorder %v837_v13, 0.5  ;;  %v841_v14 = vmul.f32 0.25, %v837_v13  ;;  %v845_v16 = vsel %vm43_vm4, %v108_v47, %v140_v61  ;;  %p602_p8 = scmp.ne.s32.totalorder %s499_s20, %s601_s21  ;;  %p607_p10 = scmp.lt.s32.totalorder %s601_s21, %s601_s21 }
  0x27   :  { %219 = vst [vmem:[#allocation5 + $0x90] sm:$0xff] %v528_v2  ;;  %v849_v17 = vsel %vm44_vm5, %v109_v51, %v141_v62  ;;  %v529_v21 = vsel %vm171_vm1, 1.0, %v630_v7  ;;  %vm172_vm2 = vcmp.gt.f32.partialorder %v845_v16, 0.5  ;;  %v856_v22 = vmul.f32 0.25, %v845_v16  ;;  %v236_v62 = vld [vmem:[#allocation2 + $0x110] sm:$0xff] }
  0x28   :  { %vm173_vm3 = vcmp.gt.f32.partialorder %v849_v17, 0.5  ;;  %220 = vst [vmem:[#allocation5 + $0x98] sm:$0xff] %v529_v21  ;;  %v530_v11 = vsel %vm172_vm2, 1.0, %v630_v7  ;;  %v866_v30 = vmul.f32 0.25, %v849_v17  ;;  %v870_v34 = vsel %vm45_vm6, %v110_v52, %v142_v63  ;;  %v245_v17 = vld [vmem:[#allocation2 + $0x158] sm:$0xff]  ;;  %p608_p11 = por %p607_p10, %p606_p9 }
  0x29   :  { %v531_v29 = vsel %vm173_vm3, 1.0, %v630_v7  ;;  %221 = vst [vmem:[#allocation5 + $0xa0] sm:$0xff] %v530_v11  ;;  %vm174_vm4 = vcmp.gt.f32.partialorder %v870_v34, 0.5  ;;  %v874_v41 = vmul.f32 0.25, %v870_v34  ;;  %v143_v42 = vadd.f32 %v726_v26, %v111_v18  ;;  %v246_v34 = vld [vmem:[#allocation2 + $0x160] sm:$0xff] }
  0x2a   :  { %222 = vst [vmem:[#allocation5 + $0xa8] sm:$0xff] %v531_v29  ;;  %v144_v43 = vadd.f32 %v740_v31, %v112_v20  ;;  %v532_v44 = vsel %vm174_vm4, 1.0, %v630_v7  ;;  %v145_v12 = vadd.f32 %v751_v35, %v113_v5  ;;  %v146_v46 = vadd.f32 %v755_v36, %v114_v6  ;;  %p609_p12 = pnand %p608_p11, %p602_p8 }
  0x2b   :  { %v147_v47 = vadd.f32 %v764_v40, %v115_v25  ;;  %223 = vst [vmem:[#allocation5 + $0xb0] sm:$0xff] %v532_v44  ;;  %v886_v48 = vsel %vm46_vm7, %v111_v18, %v143_v42  ;;  %v148_v31 = vadd.f32 %v774_v45, %v116_v38  ;;  %v149_v51 = vadd.f32 %v781_v49, %v117_v39 }
  0x2c   :  { %v890_v26 = vsel %vm47_vm8, %v112_v20, %v144_v43  ;;  %vm175_vm5 = vcmp.gt.f32.partialorder %v886_v48, 0.5  ;;  %v896_v35 = vmul.f32 0.25, %v886_v48  ;;  %v910_v40 = vsel %vm48_vm9, %v113_v5, %v145_v12  ;;  %v241_v12 = vld [vmem:[#allocation2 + $0x138] sm:$0xff] }
  0x2d   :  { %vm176_vm6 = vcmp.gt.f32.partialorder %v890_v26, 0.5  ;;  %v900_v36 = vmul.f32 0.25, %v890_v26  ;;  %v533_v15 = vsel %vm175_vm5, 1.0, %v630_v7  ;;  %v914_v45 = vsel %vm49_vm10, %v114_v6, %v146_v46 }
  0x2e   :  { %v534_v19 = vsel %vm176_vm6, 1.0, %v630_v7  ;;  %224 = vst [vmem:[#allocation5 + $0xb8] sm:$0xff] %v533_v15  ;;  %vm177_vm7 = vcmp.gt.f32.partialorder %v910_v40, 0.5  ;;  %v918_v49 = vmul.f32 0.25, %v910_v40  ;;  %vm178_vm8 = vcmp.gt.f32.partialorder %v914_v45, 0.5 }
  0x2f   :  { %225 = vst [vmem:[#allocation5 + $0xc0] sm:$0xff] %v534_v19  ;;  %v922_v52 = vmul.f32 0.25, %v914_v45  ;;  %v535_v23 = vsel %vm177_vm7, 1.0, %v630_v7  ;;  %v536_v24 = vsel %vm178_vm8, 1.0, %v630_v7  ;;  %v932_v55 = vsel %vm50_vm11, %v115_v25, %v147_v47  ;;  %v238_v25 = vld [vmem:[#allocation2 + $0x120] sm:$0xff] }
  0x30   :  { %v936_v56 = vsel %vm51_vm12, %v116_v38, %v148_v31  ;;  %226 = vst [vmem:[#allocation5 + $0xc8] sm:$0xff] %v535_v23  ;;  %227 = vst [vmem:[#allocation5 + $0xd0] sm:$0xff] %v536_v24  ;;  %vm179_vm9 = vcmp.gt.f32.partialorder %v932_v55, 0.5  ;;  %v940_v59 = vmul.f32 0.25, %v932_v55  ;;  %v954_v0 = vsel %vm52_vm13, %v117_v39, %v149_v51  ;;  %v239_v38 = vld [vmem:[#allocation2 + $0x128] sm:$0xff]  ;;  %v240_v39 = vld [vmem:[#allocation2 + $0x130] sm:$0xff] }
  0x31   :  { %vm1262_vm10 = vcmp.gt.f32.partialorder %v936_v56, 0.5  ;;  %v944_v61 = vmul.f32 0.25, %v936_v56  ;;  %v537_v28 = vsel %vm179_vm9, 1.0, %v630_v7  ;;  %v150_v1 = vadd.f32 %v785_v50, %v118_v53  ;;  %v243_v24 = vld [vmem:[#allocation2 + $0x148] sm:$0xff] }
  0x32   :  { %v538_v63 = vsel %vm1262_vm10, 1.0, %v630_v7  ;;  %228 = vst [vmem:[#allocation5 + $0xd8] sm:$0xff] %v537_v28  ;;  %vm1263_vm11 = vcmp.gt.f32.partialorder %v954_v0, 0.5  ;;  %v959_v2 = vmul.f32 0.25, %v954_v0  ;;  %v151_v18 = vadd.f32 %v792_v54, %v119_v57  ;;  %v247_v28 = vld [vmem:[#allocation2 + $0x168] sm:$0xff] }
  0x33   :  { %229 = vst [vmem:[#allocation5 + $0xe0] sm:$0xff] %v538_v63  ;;  %v266_v20 = vadd.f32 %v808_v3, %v234_v58  ;;  %v539_v5 = vsel %vm1263_vm11, 1.0, %v630_v7  ;;  %vm1266_vm12 = vcmp.gt.f32.partialorder %v745_v33, 0.5  ;;  %v267_v50 = vadd.f32 %v823_v9, %v235_v27  ;;  %v237_v33 = vld [vmem:[#allocation2 + $0x118] sm:$0xff]  ;;  %v248_v63 = vld [vmem:[#allocation2 + $0x170] sm:$0xff]  ;;  %v365_v55 = vld [vmem:[#allocation2 + $0x188] sm:$0xff] }
  0x34   :  { %v968_v32 = vsel %vm1266_vm12, %v118_v53, %v150_v1  ;;  %v268_v21 = vadd.f32 %v833_v10, %v236_v62  ;;  %230 = vst [vmem:[#allocation5 + $0xe8] sm:$0xff] %v539_v5  ;;  %vm1267_vm10 = vcmp.gt.f32.partialorder %v757_v37, 0.5  ;;  %v269_v44 = vadd.f32 %v841_v14, %v237_v33  ;;  %v242_v53 = vld [vmem:[#allocation2 + $0x140] sm:$0xff] }
  0x35   :  { %vm182_vm13 = vcmp.gt.f32.partialorder %v968_v32, 0.5  ;;  %v974_v6 = vmul.f32 0.25, %v968_v32  ;;  %v978_v54 = vsel %vm1267_vm10, %v119_v57, %v151_v18  ;;  %v982_v3 = vsel %vm168_vm14, %v234_v58, %v266_v20  ;;  %v244_v57 = vld [vmem:[#allocation2 + $0x150] sm:$0xff] }
  0x36   :  { %v540_v9 = vsel %vm182_vm13, 1.0, %v630_v7  ;;  %vm183_vm12 = vcmp.gt.f32.partialorder %v978_v54, 0.5  ;;  %v989_v10 = vmul.f32 0.25, %v978_v54  ;;  %vm298_vm11 = vcmp.gt.f32.partialorder %v982_v3, 0.5 }
  0x37   :  { %231 = vst [vmem:[#allocation5 + $0xf0] sm:$0xff] %v540_v9  ;;  %v541_v37 = vsel %vm183_vm12, 1.0, %v630_v7  ;;  %v542_v60 = vsel %vm298_vm11, 1.0, %v630_v7  ;;  %v999_v11 = vmul.f32 0.25, %v982_v3  ;;  %v1003_v29 = vsel %vm169_vm0, %v235_v27, %v267_v50 }
  0x38   :  { %232 = vst [vmem:[#allocation5 + $0xf8] sm:$0xff] %v541_v37  ;;  %347 = vst [vmem:[#allocation5 + $0x100] sm:$0xff] %v542_v60  ;;  %vm299_vm14 = vcmp.gt.f32.partialorder %v1003_v29, 0.5  ;;  %v1007_v42 = vmul.f32 0.25, %v1003_v29  ;;  %v1011_v43 = vsel %vm170_vm15, %v236_v62, %v268_v21  ;;  %v270_v47 = vadd.f32 %v856_v22, %v238_v25 }
  0x39   :  { %v543_v4 = vsel %vm299_vm14, 1.0, %v630_v7  ;;  %vm300_vm0 = vcmp.gt.f32.partialorder %v1011_v43, 0.5  ;;  %v1019_v46 = vmul.f32 0.25, %v1011_v43  ;;  %v1027_v14 = vsel %vm171_vm1, %v237_v33, %v269_v44  ;;  %v364_v44 = vld [vmem:[#allocation2 + $0x180] sm:$0xff] }
  0x3a   :  { %348 = vst [vmem:[#allocation5 + $0x108] sm:$0xff] %v543_v4  ;;  %v544_v8 = vsel %vm300_vm0, 1.0, %v630_v7  ;;  %v271_v31 = vadd.f32 %v866_v30, %v239_v38  ;;  %v272_v51 = vadd.f32 %v874_v41, %v240_v39  ;;  %vm301_vm15 = vcmp.gt.f32.partialorder %v1027_v14, 0.5 }
  0x3b   :  { %349 = vst [vmem:[#allocation5 + $0x110] sm:$0xff] %v544_v8  ;;  %v1033_v15 = vmul.f32 0.25, %v1027_v14  ;;  %v1037_v22 = vsel %vm172_vm2, %v238_v25, %v270_v47  ;;  %v273_v19 = vadd.f32 %v896_v35, %v241_v12  ;;  %v545_v13 = vsel %vm301_vm15, 1.0, %v630_v7  ;;  %v367_v47 = vld [vmem:[#allocation2 + $0x198] sm:$0xff] }
  0x3c   :  { %vm302_vm1 = vcmp.gt.f32.partialorder %v1037_v22, 0.5  ;;  %v1045_v30 = vmul.f32 0.25, %v1037_v22  ;;  %v1049_v41 = vsel %vm173_vm3, %v239_v38, %v271_v31  ;;  %350 = vst [vmem:[#allocation5 + $0x118] sm:$0xff] %v545_v13  ;;  %v1060_v23 = vsel %vm174_vm4, %v240_v39, %v272_v51  ;;  %v249_v39 = vld [vmem:[#allocation2 + $0x178] sm:$0xff]  ;;  %v369_v13 = vld [vmem:[#allocation2 + $0x1a8] sm:$0xff] }
  0x3d   :  { %v546_v16 = vsel %vm302_vm1, 1.0, %v630_v7  ;;  %vm303_vm2 = vcmp.gt.f32.partialorder %v1049_v41, 0.5  ;;  %v1056_v35 = vmul.f32 0.25, %v1049_v41  ;;  %vm304_vm3 = vcmp.gt.f32.partialorder %v1060_v23, 0.5 }
  0x3e   :  { %351 = vst [vmem:[#allocation5 + $0x120] sm:$0xff] %v546_v16  ;;  %v547_v58 = vsel %vm303_vm2, 1.0, %v630_v7  ;;  %v1067_v27 = vmul.f32 0.25, %v1060_v23  ;;  %v1071_v62 = vsel %vm175_vm5, %v241_v12, %v273_v19  ;;  %v548_v1 = vsel %vm304_vm3, 1.0, %v630_v7  ;;  %v368_v19 = vld [vmem:[#allocation2 + $0x1a0] sm:$0xff] }
  0x3f   :  { %352 = vst [vmem:[#allocation5 + $0x128] sm:$0xff] %v547_v58  ;;  %vm305_vm4 = vcmp.gt.f32.partialorder %v1071_v62, 0.5  ;;  %v1078_v18 = vmul.f32 0.25, %v1071_v62  ;;  %v274_v20 = vadd.f32 %v900_v36, %v242_v53  ;;  %353 = vst [vmem:[#allocation5 + $0x130] sm:$0xff] %v548_v1  ;;  %v275_v5 = vadd.f32 %v918_v49, %v243_v24  ;;  %v371_v1 = vld [vmem:[#allocation2 + $0x1b8] sm:$0xff] }
  0x40   :  { %v549_v48 = vsel %vm305_vm4, 1.0, %v630_v7  ;;  %v276_v50 = vadd.f32 %v922_v52, %v244_v57  ;;  %v277_v21 = vadd.f32 %v940_v59, %v245_v17  ;;  %v278_v9 = vadd.f32 %v944_v61, %v246_v34 }
  0x41   :  { %354 = vst [vmem:[#allocation5 + $0x138] sm:$0xff] %v549_v48  ;;  %v1089_v33 = vsel %vm176_vm6, %v242_v53, %v274_v20  ;;  %v279_v36 = vadd.f32 %v959_v2, %v247_v28  ;;  %v280_v25 = vadd.f32 %v974_v6, %v248_v63  ;;  %v1100_v49 = vsel %vm177_vm7, %v243_v24, %v275_v5  ;;  %v372_v20 = vld [vmem:[#allocation2 + $0x1c0] sm:$0xff]  ;;  %v373_v48 = vld [vmem:[#allocation2 + $0x1c8] sm:$0xff] }
  0x42   :  { %vm306_vm5 = vcmp.gt.f32.partialorder %v1089_v33, 0.5  ;;  %v1096_v37 = vmul.f32 0.25, %v1089_v33  ;;  %v1104_v26 = vsel %vm178_vm8, %v244_v57, %v276_v50  ;;  %vm1265_vm6 = vcmp.gt.f32.partialorder %v1100_v49, 0.5  ;;  %v374_v50 = vld [vmem:[#allocation2 + $0x1d0] sm:$0xff] }
  0x43   :  { %v550_v52 = vsel %vm306_vm5, 1.0, %v630_v7  ;;  %v1111_v59 = vmul.f32 0.25, %v1100_v49  ;;  %vm1264_vm10 = vcmp.gt.f32.partialorder %v1104_v26, 0.5  ;;  %v551_v40 = vsel %vm1265_vm6, 1.0, %v630_v7 }
  0x44   :  { %355 = vst [vmem:[#allocation5 + $0x140] sm:$0xff] %v550_v52  ;;  %v552_v45 = vsel %vm1264_vm10, 1.0, %v630_v7  ;;  %v1121_v61 = vmul.f32 0.25, %v1104_v26  ;;  %v1125_v2 = vsel %vm179_vm9, %v245_v17, %v277_v21  ;;  %356 = vst [vmem:[#allocation5 + $0x148] sm:$0xff] %v551_v40  ;;  %vm1268_vm8 = vcmp.gt.f32.partialorder %v936_v56, 0.5  ;;  %v366_v56 = vld [vmem:[#allocation2 + $0x190] sm:$0xff] }
  0x45   :  { %357 = vst [vmem:[#allocation5 + $0x150] sm:$0xff] %v552_v45  ;;  %vm309_vm7 = vcmp.gt.f32.partialorder %v1125_v2, 0.5  ;;  %v1129_v6 = vmul.f32 0.25, %v1125_v2  ;;  %v1133_v60 = vsel %vm1268_vm8, %v246_v34, %v278_v9  ;;  %vm1269_vm10 = vcmp.gt.f32.partialorder %v954_v0, 0.5  ;;  %v375_v21 = vld [vmem:[#allocation2 + $0x1d8] sm:$0xff]  ;;  %v376_v9 = vld [vmem:[#allocation2 + $0x1e0] sm:$0xff] }
  0x46   :  { %v1137_v38 = vsel %vm1269_vm10, %v247_v28, %v279_v36  ;;  %v553_v12 = vsel %vm309_vm7, 1.0, %v630_v7  ;;  %vm310_vm9 = vcmp.gt.f32.partialorder %v1133_v60, 0.5  ;;  %v1144_v4 = vmul.f32 0.25, %v1133_v60 }
  0x47   :  { %vm311_vm6 = vcmp.gt.f32.partialorder %v1137_v38, 0.5  ;;  %358 = vst [vmem:[#allocation5 + $0x158] sm:$0xff] %v553_v12  ;;  %v554_v0 = vsel %vm310_vm9, 1.0, %v630_v7  ;;  %v1154_v31 = vmul.f32 0.25, %v1137_v38  ;;  %v1158_v51 = vsel %vm182_vm13, %v248_v63, %v280_v25 }
  0x48   :  { %v555_v8 = vsel %vm311_vm6, 1.0, %v630_v7  ;;  %359 = vst [vmem:[#allocation5 + $0x160] sm:$0xff] %v554_v0  ;;  %vm312_vm10 = vcmp.gt.f32.partialorder %v1158_v51, 0.5  ;;  %v1162_v53 = vmul.f32 0.25, %v1158_v51  ;;  %v281_v16 = vadd.f32 %v989_v10, %v249_v39 }
  0x49   :  { %360 = vst [vmem:[#allocation5 + $0x168] sm:$0xff] %v555_v8  ;;  %v396_v24 = vadd.f32 %v999_v11, %v364_v44  ;;  %v556_v57 = vsel %vm312_vm10, 1.0, %v630_v7  ;;  %v397_v32 = vadd.f32 %v1007_v42, %v365_v55  ;;  %v398_v17 = vadd.f32 %v1019_v46, %v366_v56 }
  0x4a   :  { %v399_v58 = vadd.f32 %v1033_v15, %v367_v47  ;;  %361 = vst [vmem:[#allocation5 + $0x170] sm:$0xff] %v556_v57  ;;  %v1174_v34 = vsel %vm183_vm12, %v249_v39, %v281_v16  ;;  %v400_v11 = vadd.f32 %v1045_v30, %v368_v19  ;;  %v401_v28 = vadd.f32 %v1056_v35, %v369_v13  ;;  %v370_v30 = vld [vmem:[#allocation2 + $0x1b0] sm:$0xff] }
  0x4b   :  { %v412_v10 = vsel %vm298_vm11, %v364_v44, %v396_v24  ;;  %vm313_vm13 = vcmp.gt.f32.partialorder %v1174_v34, 0.5  ;;  %v1182_v42 = vmul.f32 0.25, %v1174_v34  ;;  %v413_v46 = vsel %vm299_vm14, %v365_v55, %v397_v32 }
  0x4c   :  { %vm428_vm8 = vcmp.gt.f32.partialorder %v412_v10, 0.5  ;;  %v557_v54 = vsel %vm313_vm13, 1.0, %v630_v7  ;;  %vm429_vm11 = vcmp.gt.f32.partialorder %v413_v46, 0.5  ;;  %v414_v15 = vsel %vm300_vm0, %v366_v56, %v398_v17 }
  0x4d   :  { %v558_v3 = vsel %vm428_vm8, 1.0, %v630_v7  ;;  %362 = vst [vmem:[#allocation5 + $0x178] sm:$0xff] %v557_v54  ;;  %v559_v35 = vsel %vm429_vm11, 1.0, %v630_v7  ;;  %vm430_vm12 = vcmp.gt.f32.partialorder %v414_v15, 0.5  ;;  %v415_v29 = vsel %vm301_vm15, %v367_v47, %v399_v58 }
  0x4e   :  { %477 = vst [vmem:[#allocation5 + $0x180] sm:$0xff] %v558_v3  ;;  %v416_v63 = vsel %vm302_vm1, %v368_v19, %v400_v11  ;;  %478 = vst [vmem:[#allocation5 + $0x188] sm:$0xff] %v559_v35  ;;  %v560_v5 = vsel %vm430_vm12, 1.0, %v630_v7  ;;  %vm431_vm14 = vcmp.gt.f32.partialorder %v415_v29, 0.5  ;;  %v417_v43 = vsel %vm303_vm2, %v369_v13, %v401_v28 }
  0x4f   :  { %vm432_vm0 = vcmp.gt.f32.partialorder %v416_v63, 0.5  ;;  %479 = vst [vmem:[#allocation5 + $0x190] sm:$0xff] %v560_v5  ;;  %v561_v14 = vsel %vm431_vm14, 1.0, %v630_v7  ;;  %vm433_vm15 = vcmp.gt.f32.partialorder %v417_v43, 0.5  ;;  %v402_v36 = vadd.f32 %v1067_v27, %v370_v30 }
  0x50   :  { %v562_v22 = vsel %vm432_vm0, 1.0, %v630_v7  ;;  %480 = vst [vmem:[#allocation5 + $0x198] sm:$0xff] %v561_v14  ;;  %v563_v25 = vsel %vm433_vm15, 1.0, %v630_v7  ;;  %v403_v52 = vadd.f32 %v1078_v18, %v371_v1  ;;  %v404_v41 = vadd.f32 %v1096_v37, %v372_v20 }
  0x51   :  { %481 = vst [vmem:[#allocation5 + $0x1a0] sm:$0xff] %v562_v22  ;;  %v405_v40 = vadd.f32 %v1111_v59, %v373_v48  ;;  %482 = vst [vmem:[#allocation5 + $0x1a8] sm:$0xff] %v563_v25  ;;  %v418_v45 = vsel %vm304_vm3, %v370_v30, %v402_v36  ;;  %v406_v39 = vadd.f32 %v1121_v61, %v374_v50  ;;  %vm1270_vm2 = vcmp.gt.f32.partialorder %v1100_v49, 0.5  ;;  %v377_v59 = vld [vmem:[#allocation2 + $0x1e8] sm:$0xff]  ;;  %v378_v61 = vld [vmem:[#allocation2 + $0x1f0] sm:$0xff] }
  0x52   :  { %v407_v44 = vadd.f32 %v1129_v6, %v375_v21  ;;  %v408_v27 = vadd.f32 %v1144_v4, %v376_v9  ;;  %vm434_vm1 = vcmp.gt.f32.partialorder %v418_v45, 0.5  ;;  %v419_v55 = vsel %vm305_vm4, %v371_v1, %v403_v52  ;;  %v379_v4 = vld [vmem:[#allocation2 + $0x1f8] sm:$0xff] }
  0x53   :  { %v420_v18 = vsel %vm306_vm5, %v372_v20, %v404_v41  ;;  %v421_v37 = vsel %vm1270_vm2, %v373_v48, %v405_v40  ;;  %v564_v23 = vsel %vm434_vm1, 1.0, %v630_v7  ;;  %vm435_vm3 = vcmp.gt.f32.partialorder %v419_v55, 0.5 }
  0x54   :  { %vm436_vm8 = vcmp.gt.f32.partialorder %v420_v18, 0.5  ;;  %vm437_vm11 = vcmp.gt.f32.partialorder %v421_v37, 0.5  ;;  %483 = vst [vmem:[#allocation5 + $0x1b0] sm:$0xff] %v564_v23  ;;  %v565_v6 = vsel %vm435_vm3, 1.0, %v630_v7  ;;  %vm1271_vm4 = vcmp.gt.f32.partialorder %v1104_v26, 0.5 }
  0x55   :  { %v566_v12 = vsel %vm436_vm8, 1.0, %v630_v7  ;;  %v567_v62 = vsel %vm437_vm11, 1.0, %v630_v7  ;;  %v422_v33 = vsel %vm1271_vm4, %v374_v50, %v406_v39  ;;  %484 = vst [vmem:[#allocation5 + $0x1b8] sm:$0xff] %v565_v6  ;;  %v423_v49 = vsel %vm309_vm7, %v375_v21, %v407_v44 }
  0x56   :  { %485 = vst [vmem:[#allocation5 + $0x1c0] sm:$0xff] %v566_v12  ;;  %486 = vst [vmem:[#allocation5 + $0x1c8] sm:$0xff] %v567_v62  ;;  %vm438_vm5 = vcmp.gt.f32.partialorder %v422_v33, 0.5  ;;  %v424_v56 = vsel %vm310_vm9, %v376_v9, %v408_v27  ;;  %v409_v47 = vadd.f32 %v1154_v31, %v377_v59  ;;  %vm439_vm12 = vcmp.gt.f32.partialorder %v423_v49, 0.5 }
  0x57   :  { %v568_v0 = vsel %vm438_vm5, 1.0, %v630_v7  ;;  %vm440_vm14 = vcmp.gt.f32.partialorder %v424_v56, 0.5  ;;  %v410_v26 = vadd.f32 %v1162_v53, %v378_v61  ;;  %v569_v8 = vsel %vm439_vm12, 1.0, %v630_v7 }
  0x58   :  { %487 = vst [vmem:[#allocation5 + $0x1d0] sm:$0xff] %v568_v0  ;;  %v570_v19 = vsel %vm440_vm14, 1.0, %v630_v7  ;;  %v425_v2 = vsel %vm311_vm6, %v377_v59, %v409_v47  ;;  %v411_v13 = vadd.f32 %v1182_v42, %v379_v4  ;;  %488 = vst [vmem:[#allocation5 + $0x1d8] sm:$0xff] %v569_v8 }
  0x59   :  { %489 = vst [vmem:[#allocation5 + $0x1e0] sm:$0xff] %v570_v19  ;;  %vm441_vm7 = vcmp.gt.f32.partialorder %v425_v2, 0.5  ;;  %v426_v60 = vsel %vm312_vm10, %v378_v61, %v410_v26 }
  0x5a   :  { %v571_v31 = vsel %vm441_vm7, 1.0, %v630_v7  ;;  %vm442_vm9 = vcmp.gt.f32.partialorder %v426_v60, 0.5  ;;  %v427_v53 = vsel %vm313_vm13, %v379_v4, %v411_v13 }
  0x5b   :  { %490 = vst [vmem:[#allocation5 + $0x1e8] sm:$0xff] %v571_v31  ;;  %v572_v38 = vsel %vm442_vm9, 1.0, %v630_v7  ;;  %vm443_vm6 = vcmp.gt.f32.partialorder %v427_v53, 0.5 }
  0x5c   :  { %491 = vst [vmem:[#allocation5 + $0x1f0] sm:$0xff] %v572_v38  ;;  %v573_v16 = vsel %vm443_vm6, 1.0, %v630_v7 }
  0x5d   :  { %492 = vst [vmem:[#allocation5 + $0x1f8] sm:$0xff] %v573_v16 }
  0x5e   :  { %612 = shalt.err (!%p609_p12)
}
  0x5f   :  { %s613_s24 = scalar_lea.hbm %s1259_s1, 8192 }
  0x60   :  { %p614_p13 = scmp.ne.s32.totalorder %s1259_s1, %s613_s24  ;;  %p617_p0 = scmp.lt.u32.totalorder %s613_s24, %s1259_s1 }
  0x62   :  { %p619_p1 = pnand %p617_p0, %p614_p13 }
  0x64   :  { %622 = shalt.err (!%p619_p1)
}
  0x65   :  { %504 = dma.vmem_to_hbm [thread:$0]  %s499_s20, 8192, %s1259_s1, [#allocation4], %s628_s16, %s628_s16, %s629_s17  }
  0x66   :  { %625 = dma.done.wait [#allocation4], 8192  }
  0x67   :  { %626 = vsyncadd [#allocation4], 4294959104 }
  0x68   :  { %508 = vsyncpa [#allocation3], 1 }
  0x69   :  { %509 = vsyncpa [#allocation4], 1 }

</bundles_post_ra>
